<compile_context>
chip_gen: v7x
topology: tpu7x:2x2x1
jax: 0.10.0
libtpu: 0.0.40
codegen_flags: <defaults>
</compile_context>

<pallas_src>
import math
from functools import partial

import jax
import jax.numpy as jnp
import numpy as np
from jax.experimental import pallas as pl
from jax.experimental.pallas import tpu as pltpu


def _round_up(x, m):
    return ((x + m - 1) // m) * m


def _choose_tb(B, V, target_m):
    """Pick the per-step batch tile TB and the padded batch size B_pad."""
    tb = max(1, target_m // V)
    if tb >= B:
        # Single batch tile: pad B just enough that TB*V is sublane-aligned.
        m_align = 8 // math.gcd(V, 8)
        b_pad = _round_up(B, m_align)
        return b_pad, b_pad
    # Multiple batch tiles: make TB a multiple of 8 so both the (TB, F) pooled
    # block and the (TB*V, F) aux block are sublane-dense.
    tb = max(8, _round_up(tb, 8))
    return tb, _round_up(B, tb)


def _make_kernel(tb, v):
    def kernel(x_ref, w_ref, b_ref, aux_ref, pooled_ref, acc_ref):
        # x_ref:      (TB*V, tk)  bf16   views of TB batch elements, one K tile
        # w_ref:      (tk, F)     bf16   weight K tile
        # b_ref:      (1, F)      f32    bias
        # aux_ref:    (TB*V, F)   f32    per-view features (dense output slab)
        # pooled_ref: (TB, F)     f32    max over views
        # acc_ref:    (TB*V, F)   f32    matmul accumulator (VMEM scratch)
        k = pl.program_id(1)

        @pl.when(k == 0)
        def _init():
            acc_ref[...] = jnp.zeros_like(acc_ref)

        acc_ref[...] += jnp.dot(
            x_ref[...], w_ref[...], preferred_element_type=jnp.float32
        )

        @pl.when(k == pl.num_programs(1) - 1)
        def _finalize():
            feats = acc_ref[...] + b_ref[...]              # (TB*V, F) f32
            aux_ref[...] = feats.astype(aux_ref.dtype)
            f3 = feats.reshape(tb, v, feats.shape[-1])     # (TB, V, F)
            pooled_ref[...] = jnp.max(f3, axis=1).astype(pooled_ref.dtype)

    return kernel


@partial(jax.jit, static_argnames=("tk", "target_m"))
def view_max_aggregate(mvimages, weight, bias, *, tk=512, target_m=256):
    """mvimages: (B, V, C, D, H, W) float32. Returns (pooled.squeeze(), aux)."""
    B, V, C, D, H, W = mvimages.shape
    K = C * D * H * W
    F = weight.shape[1]

    # Tile / padding choices.
    F_pad = _round_up(F, 128)
    tk = _round_up(min(tk, _round_up(K, 128)), 128)
    K_pad = _round_up(K, tk)
    tb, B_pad = _choose_tb(B, V, target_m)
    mrows = tb * V

    # bf16 operands, f32 accumulation (kernel is HBM-bound).
    x2d = mvimages.reshape(B * V, K).astype(jnp.bfloat16)
    w = weight.astype(jnp.bfloat16)
    b2 = bias.reshape(1, F).astype(jnp.float32)

    if B_pad != B:
        x2d = jnp.pad(x2d, ((0, (B_pad - B) * V), (0, 0)))
    if K_pad != K:
        x2d = jnp.pad(x2d, ((0, 0), (0, K_pad - K)))
        w = jnp.pad(w, ((0, K_pad - K), (0, 0)))
    if F_pad != F:
        w = jnp.pad(w, ((0, 0), (0, F_pad - F)))
        b2 = jnp.pad(b2, ((0, 0), (0, F_pad - F)))

    grid = (B_pad // tb, K_pad // tk)

    # Rough VMEM budget (double-buffered inputs/outputs + accumulator), with
    # margin; stays well inside v7x's 64 MiB physical VMEM for default tiles.
    est = (
        2 * (mrows * tk * 2 + tk * F_pad * 2 + F_pad * 4)
        + 2 * (mrows * F_pad * 4 + tb * F_pad * 4)
        + mrows * F_pad * 4
    )
    vmem_limit = min(48 * 1024 * 1024, max(8 * 1024 * 1024, 2 * est))

    aux2d, pooled = pl.pallas_call(
        _make_kernel(tb, V),
        out_shape=(
            jax.ShapeDtypeStruct((B_pad * V, F_pad), jnp.float32),  # aux slab
            jax.ShapeDtypeStruct((B_pad, F_pad), jnp.float32),      # pooled
        ),
        grid_spec=pltpu.PrefetchScalarGridSpec(
            num_scalar_prefetch=0,
            grid=grid,
            in_specs=[
                pl.BlockSpec((mrows, tk), lambda bi, ki: (bi, ki)),
                pl.BlockSpec((tk, F_pad), lambda bi, ki: (ki, 0)),
                pl.BlockSpec((1, F_pad), lambda bi, ki: (0, 0)),
            ],
            out_specs=[
                pl.BlockSpec((mrows, F_pad), lambda bi, ki: (bi, 0)),
                pl.BlockSpec((tb, F_pad), lambda bi, ki: (bi, 0)),
            ],
            scratch_shapes=[pltpu.VMEM((mrows, F_pad), jnp.float32)],
        ),
        compiler_params=pltpu.CompilerParams(
            dimension_semantics=("parallel", "arbitrary"),
            vmem_limit_bytes=vmem_limit,
        ),
    )(x2d, w, b2)

    aux = aux2d[: B * V, :F].reshape(B, V, F)
    pooled = pooled[:B, :F]
    # torch .squeeze() removes all size-1 dims
    return jnp.squeeze(pooled), aux


if __name__ == "__main__":
    # Small shapes consistent with (B, V, C, D, H, W)
    B, V, C, D, H, W = 2, 4, 4, 4, 8, 8
    F = 128
    K = C * D * H * W  # 1024

    key = jax.random.PRNGKey(0)
    k_x, k_w, k_b = jax.random.split(key, 3)
    mvimages = jax.random.normal(k_x, (B, V, C, D, H, W), dtype=jnp.float32)

    # Deterministic synthetic "model" parameters (Linear K -> F),
    # lifting_net = identity.
    weight = jax.random.normal(k_w, (K, F), dtype=jnp.float32) * (1.0 / np.sqrt(K))
    bias = jax.random.normal(k_b, (F,), dtype=jnp.float32) * 0.01

    pooled, aux = view_max_aggregate(mvimages, weight, bias)
    pooled = jax.block_until_ready(pooled)
    aux = jax.block_until_ready(aux)

    # Reference in plain JAX with the same bf16 operands / f32 accumulation.
    x_bf = mvimages.reshape(B * V, K).astype(jnp.bfloat16)
    w_bf = weight.astype(jnp.bfloat16)
    aux_ref = (
        jnp.dot(x_bf, w_bf, preferred_element_type=jnp.float32) + bias
    ).reshape(B, V, F)
    pooled_ref = jnp.max(aux_ref, axis=1)

    np.testing.assert_allclose(np.asarray(aux), np.asarray(aux_ref),
                               rtol=2e-3, atol=2e-3)
    np.testing.assert_allclose(np.asarray(pooled), np.asarray(pooled_ref),
                               rtol=2e-3, atol=2e-3)
    # Internal consistency: pooled is exactly the max over views of aux.
    np.testing.assert_allclose(np.asarray(pooled),
                               np.max(np.asarray(aux), axis=1),
                               rtol=0, atol=0)

    assert pooled.shape == (B, F) and aux.shape == (B, V, F)
    print("KERNEL_OK")
</pallas_src>

<mosaic_0001>
module attributes {stable_mosaic.version = 11 : i64} {
  func.func @kernel(%arg0: i32, %arg1: i32, %arg2: memref<8x512xbf16, #tpu.memory_space<vmem>>, %arg3: memref<512x128xbf16, #tpu.memory_space<vmem>>, %arg4: memref<1x128xf32, #tpu.memory_space<vmem>>, %arg5: memref<8x128xf32, #tpu.memory_space<vmem>>, %arg6: memref<2x128xf32, #tpu.memory_space<vmem>>, %arg7: memref<8x128xf32, #tpu.memory_space<vmem>>) attributes {dimension_semantics = [#tpu.dimension_semantics<parallel>, #tpu.dimension_semantics<arbitrary>], iteration_bounds = array<i64: 1, 2>, scalar_prefetch = 0 : i64, scratch_operands = 1 : i64, tpu.core_type = #tpu.core_type<tc>, window_params = [{transform_indices = @transform_0, window_bounds = array<i64: 8, 512>}, {transform_indices = @transform_1, window_bounds = array<i64: 512, 128>}, {pipeline_mode = #tpu.pipeline_mode<synchronous>, transform_indices = @transform_2, window_bounds = array<i64: 1, 128>}, {transform_indices = @transform_3, window_bounds = array<i64: 8, 128>}, {transform_indices = @transform_4, window_bounds = array<i64: 2, 128>}]} {
    %c0_i32 = arith.constant 0 : i32
    %0 = arith.cmpi eq, %arg1, %c0_i32 : i32
    %1 = arith.extui %0 : i1 to i32
    %c0_i32_0 = arith.constant 0 : i32
    %2 = arith.cmpi ne, %1, %c0_i32_0 : i32
    scf.if %2 {
      %cst_9 = arith.constant 0.000000e+00 : f32
      %12 = vector.broadcast %cst_9 : f32 to vector<8x128xf32>
      %c0_10 = arith.constant 0 : index
      %c0_11 = arith.constant 0 : index
      %13 = vector.load %arg7[%c0_10, %c0_11] : memref<8x128xf32, #tpu.memory_space<vmem>>, vector<8x128xf32>
      tpu.vector_store %arg7[%c0_10, %c0_11], %12 {strides = array<i32>} : memref<8x128xf32, #tpu.memory_space<vmem>>, vector<8x128xf32>,
    } else {
    }
    %c0 = arith.constant 0 : index
    %c0_1 = arith.constant 0 : index
    %3 = vector.load %arg7[%c0, %c0_1] : memref<8x128xf32, #tpu.memory_space<vmem>>, vector<8x128xf32>
    %c0_2 = arith.constant 0 : index
    %c0_3 = arith.constant 0 : index
    %4 = vector.load %arg2[%c0_2, %c0_3] : memref<8x512xbf16, #tpu.memory_space<vmem>>, vector<8x512xbf16>
    %c0_4 = arith.constant 0 : index
    %c0_5 = arith.constant 0 : index
    %5 = vector.load %arg3[%c0_4, %c0_5] : memref<512x128xbf16, #tpu.memory_space<vmem>>, vector<512x128xbf16>
    %cst = arith.constant dense<0.000000e+00> : vector<8x128xf32>
    %6 = tpu.matmul %4, %5, %cst {dimension_numbers = #tpu.dot_dimension_numbers<[1], [0], [0], [1], [0, 0, 1, 1], [], []>} : vector<8x512xbf16>, vector<512x128xbf16>, vector<8x128xf32> -> vector<8x128xf32>
    %7 = arith.addf %3, %6 : vector<8x128xf32>
    %c0_6 = arith.constant 0 : index
    %c0_7 = arith.constant 0 : index
    %8 = vector.load %arg7[%c0_6, %c0_7] : memref<8x128xf32, #tpu.memory_space<vmem>>, vector<8x128xf32>
    tpu.vector_store %arg7[%c0_6, %c0_7], %7 {strides = array<i32>} : memref<8x128xf32, #tpu.memory_space<vmem>>, vector<8x128xf32>,
    %c1_i32 = arith.constant 1 : i32
    %9 = arith.cmpi eq, %arg1, %c1_i32 : i32
    %10 = arith.extui %9 : i1 to i32
    %c0_i32_8 = arith.constant 0 : i32
    %11 = arith.cmpi ne, %10, %c0_i32_8 : i32
    scf.if %11 {
      %c0_9 = arith.constant 0 : index
      %c0_10 = arith.constant 0 : index
      %12 = vector.load %arg7[%c0_9, %c0_10] : memref<8x128xf32, #tpu.memory_space<vmem>>, vector<8x128xf32>
      %c0_11 = arith.constant 0 : index
      %c0_12 = arith.constant 0 : index
      %13 = vector.load %arg4[%c0_11, %c0_12] : memref<1x128xf32, #tpu.memory_space<vmem>>, vector<1x128xf32>
      %14 = vector.broadcast %13 : vector<1x128xf32> to vector<8x128xf32>
      %15 = arith.addf %12, %14 : vector<8x128xf32>
      %c0_13 = arith.constant 0 : index
      %c0_14 = arith.constant 0 : index
      %16 = vector.load %arg5[%c0_13, %c0_14] : memref<8x128xf32, #tpu.memory_space<vmem>>, vector<8x128xf32>
      tpu.vector_store %arg5[%c0_13, %c0_14], %15 {strides = array<i32>} : memref<8x128xf32, #tpu.memory_space<vmem>>, vector<8x128xf32>,
      %17 = vector.shape_cast %15 : vector<8x128xf32> to vector<2x4x128xf32>
      %cst_15 = arith.constant dense<0xFF800000> : vector<2x128xf32>
      %18 = vector.multi_reduction <maximumf>, %17, %cst_15 [1] : vector<2x4x128xf32> to vector<2x128xf32>
      %c0_16 = arith.constant 0 : index
      %c0_17 = arith.constant 0 : index
      %19 = vector.load %arg6[%c0_16, %c0_17] : memref<2x128xf32, #tpu.memory_space<vmem>>, vector<2x128xf32>
      tpu.vector_store %arg6[%c0_16, %c0_17], %18 {strides = array<i32>} : memref<2x128xf32, #tpu.memory_space<vmem>>, vector<2x128xf32>,
    } else {
    }
    return
  }
  func.func @transform_0(%arg0: i32, %arg1: i32) -> (i32, i32) {
    %c0_i32 = arith.constant 0 : i32
    return %arg0, %arg1 : i32, i32
  }
  func.func @transform_1(%arg0: i32, %arg1: i32) -> (i32, i32) {
    %c0_i32 = arith.constant 0 : i32
    %c0_i32_0 = arith.constant 0 : i32
    return %arg1, %c0_i32 : i32, i32
  }
  func.func @transform_2(%arg0: i32, %arg1: i32) -> (i32, i32) {
    %c0_i32 = arith.constant 0 : i32
    %c0_i32_0 = arith.constant 0 : i32
    %c0_i32_1 = arith.constant 0 : i32
    return %c0_i32, %c0_i32_0 : i32, i32
  }
  func.func @transform_3(%arg0: i32, %arg1: i32) -> (i32, i32) {
    %c0_i32 = arith.constant 0 : i32
    %c0_i32_0 = arith.constant 0 : i32
    return %arg0, %c0_i32 : i32, i32
  }
  func.func @transform_4(%arg0: i32, %arg1: i32) -> (i32, i32) {
    %c0_i32 = arith.constant 0 : i32
    %c0_i32_0 = arith.constant 0 : i32
    return %arg0, %c0_i32 : i32, i32
  }
}

</mosaic_0001>

<bundles_post_ra>
// kernel: view_max_aggregate.1
= control target key start
LH: loop header
LB: loop body
LE: loop exit
PB: predicated region body
PF: predicated region fallthrough
CT: control target
= control target key end

     0   :  { %10 = vsyncpa [#allocation4], 0  ;;  %s1167_s0 = inlined_call_operand.vmem [shape: bf16[8,1024], index: 0, kind: input, shape index: {}]   ;;  %s1168_s1 = inlined_call_operand.vmem [shape: bf16[1024,128], index: 1, kind: input, shape index: {}]   ;;  %s1169_s2 = inlined_call_operand.vmem [shape: f32[1,128], index: 2, kind: input, shape index: {}]   ;;  %s1170_s3 = inlined_call_operand.hbm [shape: f32[8,128], index: 3, kind: output, shape index: {0}]   ;;  %s1171_s4 = inlined_call_operand.hbm [shape: f32[2,128], index: 4, kind: output, shape index: {1}]  }
   0x1   :  { %11 = vsyncpa [#allocation6], 0  ;;  %s1029_s15 = smov 0   ;;  %s1031_s16 = smov 0  }
   0x2   :  { %s1033_s17 = smov 0  }
   0x3 LB: > { %s745_s18 = sadd.s32 4294967295, %s999_s17   ;;  %s26_s19 = sadd.s32 1, %s995_s16  ;;  %s999_s17 = sphi %s1033_s17, %s17_s17   ;;  %s995_s16 = sphi %s1031_s16, %s1174_s16   ;;  %s991_s15 = sphi %s1029_s15, %s1173_s15  }
   0x4   : > { %p27_p0 = scmp.ge.s32.totalorder %s26_s19, 2  ;;  %p748_p1 = scmp.ge.s32.totalorder %s999_s17, 1 }
   0x5   : > { %p197_p2 = scmp.lt.s32.totalorder %s999_s17, 3 }
   0x6   : > { %s1176_s19 = smov (%p27_p0, %s26_s19), 0 }
   0x7   : > { %p198_p3 = pnand %p748_p1, %p197_p2 }
   0x8   : > { %s749_s20 = sshll.u32 (!%p198_p3), %s991_s15, 2  ;;  %s751_s21 = sshll.u32 (!%p198_p3), %s991_s15, 6 }
   0x9   : > { %201 = sbr.rel (%p198_p3) target bundleno = 355 (0x163), region = 32  ;;  %p230_p4 = scmp.lt.s32.totalorder (!%p198_p3), %s749_s20, 7 }
   0xa   : > { %p238_p5 = scmp.lt.s32.totalorder (!%p198_p3), %s751_s21, 127  ;;  %p753_p6 = scmp.ne.s32.totalorder (!%p198_p3), %s991_s15, 0 }
  0x10   : > { %s1178_s20 = smov (!%p230_p4, %s749_s20), 7  ;;  %s1180_s21 = smov (!%p238_p5, %s751_s21), 127 }
  0x11   : > { %s750_s22 = sshll.u32 %s1178_s20, 2  ;;  %s752_s26 = sshll.u32 %s1180_s21, 2  ;;  %v1001_v0 = vmov (!%p753_p6), 0.0  }
  0x12   : > { %s1055_s25 = scalar_lea.vmem %s1167_s0, %s750_s22  ;;  %s1060_s29 = scalar_lea.vmem %s1168_s1, %s752_s26  ;;  %248 = vst [vmem:[#allocation2] sm:$0xff] (!%p753_p6), %v1001_v0 }
  0x13   : > { %247 = sbr.rel (%p753_p6) target bundleno = 26 (0x1a), region = 36 }
  0x1a PF: > { %v881_v1 = vld [vmem:[%s1060_s29 + $0x40] sm:$0xff]   ;;  %v885_v5 = vld [vmem:[%s1060_s29 + $0x48] sm:$0xff]   ;;  %v889_v9 = vld [vmem:[%s1060_s29 + $0x50] sm:$0xff]   ;;  %p790_p7 = scmp.ne.s32.totalorder %s991_s15, 1 }
  0x1b   : > { %v882_v2 = vld [vmem:[%s1060_s29 + $0xc0] sm:$0xff]   ;;  %798 = vmatprep.subr.bf16.mxu0 %v881_v1  ;;  %v886_v6 = vld [vmem:[%s1060_s29 + $0xc8] sm:$0xff]   ;;  %v890_v10 = vld [vmem:[%s1060_s29 + $0xd0] sm:$0xff]   ;;  %vm621_vm0 = vcmask (!%p790_p7), 1043456   ;;  %vm638_vm1 = vcmask (!%p790_p7), 1041409  }
  0x1c   : > { %v883_v3 = vld [vmem:[%s1060_s29] sm:$0xff]   ;;  %820 = vmatprep.subr.bf16.mxu1 %v882_v2  ;;  %v887_v7 = vld [vmem:[%s1060_s29 + $0x8] sm:$0xff]   ;;  %v891_v11 = vld [vmem:[%s1060_s29 + $0x10] sm:$0xff]  }
  0x1d   : > { %v884_v4 = vld [vmem:[%s1060_s29 + $0x80] sm:$0xff]   ;;  %799 = vmatpush3.bf16.msra.mxu0 %v883_v3  ;;  %v888_v8 = vld [vmem:[%s1060_s29 + $0x88] sm:$0xff]   ;;  %v892_v12 = vld [vmem:[%s1060_s29 + $0x90] sm:$0xff]  }
  0x1e   : > { %821 = vmatpush3.bf16.msra.mxu1 %v884_v4  ;;  %800 = vmatprep.subr.bf16.mxu0 %v885_v5  ;;  %v893_v13 = vld [vmem:[%s1060_s29 + $0x58] sm:$0xff]   ;;  %v897_v17 = vld [vmem:[%s1060_s29 + $0x60] sm:$0xff]   ;;  %v901_v21 = vld [vmem:[%s1060_s29 + $0x68] sm:$0xff]  }
  0x1f   : > { %822 = vmatprep.subr.bf16.mxu1 %v886_v6  ;;  %v894_v14 = vld [vmem:[%s1060_s29 + $0xd8] sm:$0xff]   ;;  %v898_v18 = vld [vmem:[%s1060_s29 + $0xe0] sm:$0xff]   ;;  %v902_v22 = vld [vmem:[%s1060_s29 + $0xe8] sm:$0xff]  }
  0x20   : > { %v895_v15 = vld [vmem:[%s1060_s29 + $0x18] sm:$0xff]   ;;  %v899_v19 = vld [vmem:[%s1060_s29 + $0x20] sm:$0xff]   ;;  %v903_v23 = vld [vmem:[%s1060_s29 + $0x28] sm:$0xff]  }
  0x21   : > { %801 = vmatpush3.bf16.msra.mxu0 %v887_v7  ;;  %v896_v16 = vld [vmem:[%s1060_s29 + $0x98] sm:$0xff]   ;;  %v900_v20 = vld [vmem:[%s1060_s29 + $0xa0] sm:$0xff]   ;;  %v904_v24 = vld [vmem:[%s1060_s29 + $0xa8] sm:$0xff]  }
  0x22   : > { %823 = vmatpush3.bf16.msra.mxu1 %v888_v8  ;;  %802 = vmatprep.subr.bf16.mxu0 %v889_v9  ;;  %v905_v25 = vld [vmem:[%s1060_s29 + $0x70] sm:$0xff]   ;;  %v909_v29 = vld [vmem:[%s1060_s29 + $0x78] sm:$0xff]   ;;  %v250_v33 = vld [vmem:[%s1055_s25] sm:$0xff] }
  0x23   : > { %824 = vmatprep.subr.bf16.mxu1 %v890_v10  ;;  %v906_v26 = vld [vmem:[%s1060_s29 + $0xf0] sm:$0xff]   ;;  %v910_v30 = vld [vmem:[%s1060_s29 + $0xf8] sm:$0xff]   ;;  %v251_v34 = vld [vmem:[%s1055_s25 + $0x8] sm:$0xff]  ;;  %v754_v35 = vcombine.low %v250_v33, %v250_v33  ;;  %v755_v36 = vcombine.high %v250_v33, %v250_v33 }
  0x24   : > { %v907_v27 = vld [vmem:[%s1060_s29 + $0x30] sm:$0xff]   ;;  %v911_v31 = vld [vmem:[%s1060_s29 + $0x38] sm:$0xff]   ;;  %v756_v37 = vcombine.low %v251_v34, %v251_v34  ;;  %v757_v38 = vcombine.high %v251_v34, %v251_v34  ;;  %v249_v47 = vld [vmem:[#allocation2] sm:$0xff] }
  0x25   : > { %803 = vmatpush3.bf16.msra.mxu0 %v891_v11  ;;  %v908_v28 = vld [vmem:[%s1060_s29 + $0xb0] sm:$0xff]   ;;  %v912_v32 = vld [vmem:[%s1060_s29 + $0xb8] sm:$0xff]   ;;  %554 = vmatprep.mubr.bf16.mxu0 %v755_v36  ;;  %v791_v53 = vld [vmem:[%s1169_s2] ss:$0 sm:$0xff] (!%p790_p7) }
  0x26   : > { %825 = vmatpush3.bf16.msra.mxu1 %v892_v12  ;;  %804 = vmatprep.subr.bf16.mxu0 %v893_v13 }
  0x27   : > { %826 = vmatprep.subr.bf16.mxu1 %v894_v14  ;;  %594 = vmatprep.mubr.bf16.mxu1 %v757_v38 }
  0x29   : > { %805 = vmatpush3.bf16.msra.mxu0 %v895_v15 }
  0x2a   : > { %827 = vmatpush3.bf16.msra.mxu1 %v896_v16  ;;  %806 = vmatprep.subr.bf16.mxu0 %v897_v17 }
  0x2b   : > { %828 = vmatprep.subr.bf16.mxu1 %v898_v18 }
  0x2d   : > { %807 = vmatpush3.bf16.msra.mxu0 %v899_v19 }
  0x2e   : > { %829 = vmatpush3.bf16.msra.mxu1 %v900_v20  ;;  %808 = vmatprep.subr.bf16.mxu0 %v901_v21 }
  0x2f   : > { %830 = vmatprep.subr.bf16.mxu1 %v902_v22 }
  0x31   : > { %809 = vmatpush3.bf16.msra.mxu0 %v903_v23 }
  0x32   : > { %831 = vmatpush3.bf16.msra.mxu1 %v904_v24  ;;  %810 = vmatprep.subr.bf16.mxu0 %v905_v25 }
  0x33   : > { %832 = vmatprep.subr.bf16.mxu1 %v906_v26 }
  0x35   : > { %811 = vmatpush3.bf16.msra.mxu0 %v907_v27 }
  0x36   : > { %833 = vmatpush3.bf16.msra.mxu1 %v908_v28  ;;  %812 = vmatprep.subr.bf16.mxu0 %v909_v29 }
  0x37   : > { %834 = vmatprep.subr.bf16.mxu1 %v910_v30 }
  0x39   : > { %813 = vmatpush3.bf16.msra.mxu0 %v911_v31 }
  0x3a   : > { %835 = vmatpush3.bf16.msra.mxu1 %v912_v32 }
  0x3c   : > { %555 = vmatmul.mubr.bf16.vlgmr.msra.gmra.mrb[0].mxu0 %v754_v35 }
  0x3d   : > { %595 = vmatmul.mubr.bf16.vlgmr.msra.gmra.mrb[0].mxu1 %v756_v37 }
 0x10f   : > { %v814_v39 = vpop.f32.mrb[0].mxu0 }
 0x110   : > { %v836_v40 = vpop.f32.mrb[0].mxu1  ;;  %v815_v41 = vpop.f32.mrb[1].mxu0 }
 0x111   : > { %v837_v42 = vpop.f32.mrb[1].mxu1  ;;  %v816_v43 = vadd.f32 %v815_v41, %v814_v39  ;;  %v817_v45 = vpop.f32.mrb[2].mxu0 }
 0x112   : > { %v838_v44 = vadd.f32 %v837_v42, %v836_v40  ;;  %v839_v46 = vpop.f32.mrb[2].mxu1  ;;  %v818_v48 = vpop.f32.mrb[3].mxu0  ;;  %607 = sbr.rel (%p790_p7) target bundleno = 307 (0x133), region = 40 }
 0x113   : > { %v840_v49 = vpop.f32.mrb[3].mxu1 }
 0x114   : > { %v597_v50 = vadd.f32 %v838_v44, %v816_v43 }
 0x116   : > { %v602_v51 = vadd.f32 %v597_v50, %v249_v47 }
 0x118   : > { %603 = vst [vmem:[#allocation2] sm:$0xff] %v602_v51 }
 0x11f   : > { %v608_v52 = vld [vmem:[#allocation2] sm:$0xff] }
 0x120   : > { %v616_v54 = vadd.f32 %v791_v53, %v608_v52 }
 0x122   : > { %617 = vst [vmem:[#allocation3] sm:$0xff] %v616_v54  ;;  %v619_v55 = vcombine.high %v616_v54, %v616_v54  ;;  %v622_v56 = vsel %vm621_vm0, %v616_v54, -inf }
 0x123   : > { %v623_v57 = vrot.slane %v622_v56, 4 }
 0x124   : > { %v629_v58 = vsel %vm621_vm0, %v619_v55, -inf }
 0x125   : > { %v624_v59 = vmax.f32 %v622_v56, %v623_v57  ;;  %v630_v60 = vrot.slane %v629_v58, 4 }
 0x127   : > { %v625_v61 = vrot.slane %v624_v59, 2  ;;  %v631_v62 = vmax.f32 %v629_v58, %v630_v60 }
 0x129   : > { %v626_v63 = vmax.f32 %v624_v59, %v625_v61  ;;  %v632_v0 = vrot.slane %v631_v62, 2 }
 0x12b   : > { %v627_v1 = vrot.slane %v626_v63, 1  ;;  %v633_v2 = vmax.f32 %v631_v62, %v632_v0 }
 0x12d   : > { %v628_v3 = vmax.f32 %v626_v63, %v627_v1  ;;  %v634_v4 = vrot.slane %v633_v2, 1 }
 0x12f   : > { %v635_v5 = vmax.f32 %v633_v2, %v634_v4 }
 0x131   : > { %v639_v6 = vsel %vm638_vm1, %v635_v5, %v628_v3 }
 0x132   : > { %641 = vst [vmem:[#allocation5] sm:$0x3] %v639_v6 }
 0x133 PF: > { %p1103_p8 = scmp.eq.s32.totalorder %s745_s18, 1  ;;  %s1002_s7 = smov [#allocation3]  }
 0x134   : > { %s651_s8 = sshll.u32 %s1002_s7, 4  ;;  %s1003_s9 = smov [#allocation5]   ;;  %s652_s8 = int_to_ptr.vmem [resolvable:$true] %s651_s8 }
 0x135   : > { %s664_s10 = sshll.u32 %s1003_s9, 4  ;;  %s917_s11 = scalar_lea.vmem %s652_s8, 128  ;;  %s1107_s10 = int_to_ptr.vmem [resolvable:$true] %s664_s10 }
 0x136   : > { %p918_p9 = scmp.ne.s32.totalorder %s652_s8, %s917_s11  ;;  %p924_p12 = scmp.lt.s32.totalorder %s652_s8, %s652_s8 }
 0x137   : > { %p925_p13 = scmp.lt.s32.totalorder %s917_s11, %s917_s11 }
 0x138   : > { %p919_p10 = pnand %p918_p9, %p1103_p8 }
 0x139   : > { %p926_p0 = por %p925_p13, %p924_p12 }
 0x13a   : > { %p920_p11 = pneg %p919_p10 }
 0x13c   : > { %p927_p1 = pnand %p926_p0, %p920_p11 }
 0x13e   : > { %930 = shalt.err (!%p927_p1)
}
 0x13f   : > { %s931_s14 = scalar_lea.hbm %s1170_s3, 128 }
 0x140   : > { %p932_p2 = scmp.ne.s32.totalorder %s1170_s3, %s931_s14  ;;  %p937_p5 = scmp.lt.u32.totalorder %s931_s14, %s1170_s3 }
 0x142   : > { %p933_p3 = pnand %p932_p2, %p1103_p8 }
 0x144   : > { %p934_p4 = pneg %p933_p3 }
 0x146   : > { %p939_p6 = pnand %p937_p5, %p934_p4 }
 0x148   : > { %942 = shalt.err (!%p939_p6)
}
 0x149   : > { %843 = dma.vmem_to_hbm [thread:$0]  (%p1103_p8), %s652_s8, 128, %s1170_s3, [#allocation4]  }
 0x14a   : > { %s943_s24 = scalar_lea.vmem %s1107_s10, 32  ;;  %p950_p11 = scmp.lt.s32.totalorder %s1107_s10, %s1107_s10 }
 0x14b   : > { %p944_p7 = scmp.ne.s32.totalorder %s1107_s10, %s943_s24  ;;  %p951_p12 = scmp.lt.s32.totalorder %s943_s24, %s943_s24 }
 0x14d   : > { %p945_p9 = pnand %p944_p7, %p1103_p8  ;;  %p952_p13 = por %p951_p12, %p950_p11 }
 0x14f   : > { %p946_p10 = pneg %p945_p9 }
 0x151   : > { %p953_p0 = pnand %p952_p13, %p946_p10 }
 0x153   : > { %956 = shalt.err (!%p953_p0)
}
 0x154   : > { %s957_s27 = scalar_lea.hbm %s1171_s4, 32 }
 0x155   : > { %p958_p1 = scmp.ne.s32.totalorder %s1171_s4, %s957_s27  ;;  %p963_p4 = scmp.lt.u32.totalorder %s957_s27, %s1171_s4 }
 0x157   : > { %p959_p2 = pnand %p958_p1, %p1103_p8 }
 0x159   : > { %p960_p3 = pneg %p959_p2 }
 0x15b   : > { %p965_p5 = pnand %p963_p4, %p960_p3 }
 0x15d   : > { %968 = shalt.err (!%p965_p5)
}
 0x15e   : > { %845 = dma.vmem_to_hbm [thread:$0]  (%p1103_p8), %s1107_s10, 32, %s1171_s4, [#allocation6]  }
 0x15f   : > { %982 = dma.done.wait (%p1103_p8), [#allocation4], 128  }
 0x160   : > { %984 = vsyncadd (%p1103_p8), [#allocation4], 4294967168 }
 0x161   : > { %986 = dma.done.wait (%p1103_p8), [#allocation6], 32  }
 0x162   : > { %988 = vsyncadd (%p1103_p8), [#allocation6], 4294967264 }
 0x163 PF: > { %s17_s17 = sadd.s32 1, %s999_s17   ;;  %s1173_s15 = smov %s995_s16 }
 0x164   : > { %p14_p6 = scmp.ge.s32.totalorder %s17_s17, 4   ;;  %s1174_s16 = smov %s1176_s19 }
 0x166   :  { %16 = sbr.rel (!%p14_p6) target bundleno = 3 (0x3), region = 80 }
 0x16d   :  { %681 = vsyncpa [#allocation4], 1 }
 0x16e   :  { %683 = vsyncpa [#allocation4 + $0x1], 1 }
 0x16f   :  { %684 = vsyncpa [#allocation6], 1 }

</bundles_post_ra>
